<compile_context>
chip_gen: v6e
topology: v6e:2x2x1
jax: 0.10.0
libtpu: 0.0.40
codegen_flags: <defaults>
</compile_context>

<pallas_src>
import jax
import jax.numpy as jnp
import numpy as np
from jax.experimental import pallas as pl
from jax.experimental.pallas import tpu as pltpu


def _round_up(a, b):
    return (a + b - 1) // b * b


# ---------------------------------------------------------------------------
# Kernel 1: per-channel (sum, sum-of-squares) over the full input, one HBM pass.
# ---------------------------------------------------------------------------
def _stats_kernel(x_ref, s_ref):
    # x_ref: (C_in, H, W) f32, one image.  s_ref: (C_in, 2) f32 partial sums for this image.
    xb = x_ref[...]
    sw = jnp.sum(xb, axis=2)         # (C_in, H)  lane reduce
    sqw = jnp.sum(xb * xb, axis=2)   # (C_in, H)
    s_ref[...] = jnp.concatenate(
        [jnp.sum(sw, axis=1, keepdims=True),
         jnp.sum(sqw, axis=1, keepdims=True)], axis=1)            # (C_in, 2)


def _batch_stats(x):
    """Per-channel mean / biased var of x (N, C_in, H, W) in a single pass over x."""
    N, C_in, H, W = x.shape
    count = N * H * W
    img_bytes = C_in * H * W * 4
    if 2 * img_bytes > 40 * 1024 * 1024:
        # Whole-image block would not fit double-buffered in VMEM: fall back to a fused XLA
        # sum / sum-of-squares (still one pass over x).
        s = jnp.sum(x, axis=(0, 2, 3))
        sq = jnp.sum(x * x, axis=(0, 2, 3))
    else:
        stats = pl.pallas_call(
            _stats_kernel,
            out_shape=jax.ShapeDtypeStruct((N, C_in, 2), jnp.float32),
            grid_spec=pltpu.PrefetchScalarGridSpec(
                num_scalar_prefetch=0,
                grid=(N,),
                in_specs=[pl.BlockSpec((None, C_in, H, W), lambda n: (n, 0, 0, 0))],
                out_specs=pl.BlockSpec((None, C_in, 2), lambda n: (n, 0, 0)),
            ),
            compiler_params=pltpu.CompilerParams(
                dimension_semantics=("parallel",),
                vmem_limit_bytes=int(min(max(4 * img_bytes, 8 << 20), 48 << 20)),
            ),
        )(x)
        sums = jnp.sum(stats, axis=0)        # (C_in, 2), tiny
        s, sq = sums[:, 0], sums[:, 1]
    mean = s / count
    # One-pass variance E[x^2] - E[x]^2; clamp tiny negatives from f32 cancellation.
    var = jnp.maximum(sq / count - mean * mean, 0.0)
    return mean, var


# ---------------------------------------------------------------------------
# Kernel 2: folded BN (scale/shift) -> ReLU -> 1x1 conv as a channel-major matmul.
# ---------------------------------------------------------------------------
def _bn_relu_conv1x1_kernel(x_ref, scale_ref, shift_ref, w_ref, o_ref):
    # x_ref:     (C_in, tile_s)    streaming dtype (bf16 default) subsampled activations
    # scale_ref: (C_in, 1)         f32 BN scale  = gamma / sqrt(var + eps)
    # shift_ref: (C_in, 1)         f32 BN shift  = beta - mean * scale
    # w_ref:     (C_out_p, C_in)   matmul dtype 1x1 conv weight
    # o_ref:     (C_out_p, tile_s) f32 output (NCHW-ordered spatial columns)
    h = jnp.maximum(x_ref[...].astype(jnp.float32) * scale_ref[...] + shift_ref[...], 0.0)
    o_ref[...] = jnp.dot(
        w_ref[...], h.astype(w_ref.dtype), preferred_element_type=jnp.float32
    ).astype(o_ref.dtype)


def _pick_tile_s(S, C_in, C_out_p, stream_bytes, mm_bytes, budget_bytes):
    # Per spatial column: 2x streamed x tile (double-buffered) + 2x out tile + f32 h temp
    # + matmul-dtype cast of h.  Residents (weight/scale/shift) counted at 2x because the
    # pipeline double-buffers them even with a constant index_map.
    per_col = C_in * (2 * stream_bytes + 4 + mm_bytes) + 2 * C_out_p * 4
    resident = 2 * (C_out_p * C_in * mm_bytes + 2 * C_in * 4)
    t = max(budget_bytes - resident, 0) // per_col
    t = max(128, (t // 128) * 128)
    # Prefer >= 4 spatial steps per image for pipeline / megacore overlap on large images.
    t = min(t, max(128, _round_up(pl.cdiv(S, 4), 128)))
    if t >= S:
        return S                      # single full-extent block (full-dim rule)
    return int(t)


def downsample_forward(x, gamma, beta, weight, *, stride=2, eps=1e-5,
                       matmul_dtype=jnp.bfloat16, vmem_budget_bytes=24 * 1024 * 1024):
    """BatchNorm2d (training-mode batch stats) -> ReLU -> Conv2d 1x1 stride=s, no bias.

    x: (N, C_in, H, W) NCHW (PyTorch convention). gamma, beta: (C_in,).
    weight: (C_out, C_in) (1x1 conv kernel squeezed).
    matmul_dtype: jnp.bfloat16 (default: bf16 streaming + MXU operands, f32 accumulation)
                  or jnp.float32 (exact path).
    Returns (N, C_out, Ho, Wo) with Ho = floor((H-1)/stride)+1.
    """
    N, C_in, H, W = x.shape
    C_out = weight.shape[0]
    x = x.astype(jnp.float32)

    # --- one-pass batch statistics, folded into per-channel scale/shift -----------------
    mean, var = _batch_stats(x)
    scale = gamma.astype(jnp.float32) / jnp.sqrt(var + eps)       # (C_in,)
    shift = beta.astype(jnp.float32) - mean * scale

    # --- strided subsample -> compact channel-major (N, C_in, S) intermediate -----------
    # Subsampling commutes with elementwise BN+ReLU, so only surviving positions stream.
    # No transpose, no pad; stored in the streaming dtype (bf16 by default).
    # TODO(synk): fold this subsample into the stats kernel as a second output to remove
    # this remaining XLA copy pass.
    xs = x[:, :, ::stride, ::stride]                              # (N, C_in, Ho, Wo)
    Ho, Wo = xs.shape[2], xs.shape[3]
    S = Ho * Wo
    stream_dtype = matmul_dtype
    xs3 = xs.reshape(N, C_in, S).astype(stream_dtype)             # contiguous reshape (free)

    # Weight stays (C_out, C_in): channel-major needs no transpose. Only pad C_out to a
    # sublane multiple of 8 (no-op for typical widths; output lane dim is the spatial axis).
    C_out_p = _round_up(C_out, 8)
    w = weight.astype(matmul_dtype)
    if C_out_p != C_out:
        w = jnp.pad(w, ((0, C_out_p - C_out), (0, 0)))

    stream_bytes = jnp.dtype(stream_dtype).itemsize
    mm_bytes = jnp.dtype(matmul_dtype).itemsize
    tile_s = _pick_tile_s(S, C_in, C_out_p, stream_bytes, mm_bytes, vmem_budget_bytes)
    grid = (N, pl.cdiv(S, tile_s))                                # ragged last block OK

    # VMEM accounting incl. h temp and double-buffered residents; 1.5x headroom, capped so
    # it also fits v7x's 64 MiB physical VMEM.
    actual = (tile_s * (C_in * (2 * stream_bytes + 4 + mm_bytes) + 2 * C_out_p * 4)
              + 2 * (C_out_p * C_in * mm_bytes + 2 * C_in * 4))
    vmem_limit = int(min(max(3 * actual // 2, 16 << 20), 48 << 20))

    out3 = pl.pallas_call(
        _bn_relu_conv1x1_kernel,
        out_shape=jax.ShapeDtypeStruct((N, C_out_p, S), jnp.float32),
        grid_spec=pltpu.PrefetchScalarGridSpec(
            num_scalar_prefetch=0,
            grid=grid,
            in_specs=[
                pl.BlockSpec((None, C_in, tile_s), lambda n, j: (n, 0, j)),  # streamed acts
                pl.BlockSpec((C_in, 1), lambda n, j: (0, 0)),                # resident scale
                pl.BlockSpec((C_in, 1), lambda n, j: (0, 0)),                # resident shift
                pl.BlockSpec((C_out_p, C_in), lambda n, j: (0, 0)),          # resident weight
            ],
            out_specs=pl.BlockSpec((None, C_out_p, tile_s), lambda n, j: (n, 0, j)),
        ),
        compiler_params=pltpu.CompilerParams(
            dimension_semantics=("parallel", "parallel"),
            vmem_limit_bytes=vmem_limit,
        ),
    )(xs3, scale.reshape(C_in, 1), shift.reshape(C_in, 1), w)

    if C_out_p != C_out:
        out3 = out3[:, :C_out, :]
    return out3.reshape(N, C_out, Ho, Wo)                         # already NCHW; free reshape


def _reference_forward(x, gamma, beta, weight, *, stride=2, eps=1e-5):
    mean = jnp.mean(x, axis=(0, 2, 3), keepdims=True)
    var = jnp.var(x, axis=(0, 2, 3), keepdims=True)
    h = (x - mean) / jnp.sqrt(var + eps)
    h = h * gamma.reshape(1, -1, 1, 1) + beta.reshape(1, -1, 1, 1)
    h = jnp.maximum(h, 0.0)
    h = h[:, :, ::stride, ::stride]
    return jnp.einsum("oc,nchw->nohw", weight, h)


if __name__ == "__main__":
    key = jax.random.PRNGKey(0)
    k_x, k_w, k_g, k_b, k_x2 = jax.random.split(key, 5)

    N, C_in, H, W = 2, 4, 16, 16
    C_out, stride = 8, 2

    x = jax.random.normal(k_x, (N, C_in, H, W), dtype=jnp.float32)
    gamma = 1.0 + 0.1 * jax.random.normal(k_g, (C_in,), dtype=jnp.float32)
    beta = 0.1 * jax.random.normal(k_b, (C_in,), dtype=jnp.float32)
    bound = 1.0 / np.sqrt(C_in)
    weight = jax.random.uniform(
        k_w, (C_out, C_in), dtype=jnp.float32, minval=-bound, maxval=bound
    )

    ref = _reference_forward(x, gamma, beta, weight, stride=stride)

    # 1) Default path: bf16 streaming + bf16 MXU operands, f32 accumulation.
    out = jax.block_until_ready(downsample_forward(x, gamma, beta, weight, stride=stride))
    assert out.shape == (N, C_out, H // stride, W // stride)
    np.testing.assert_allclose(np.asarray(out), np.asarray(ref), rtol=5e-2, atol=7.5e-2)

    # 2) Exact f32 opt-in path (only deviation is one-pass-stats accumulation order).
    out_f32 = jax.block_until_ready(
        downsample_forward(x, gamma, beta, weight, stride=stride, matmul_dtype=jnp.float32)
    )
    np.testing.assert_allclose(np.asarray(out_f32), np.asarray(ref), rtol=1e-4, atol=1e-4)

    # 3) Odd spatial size (H=W=14 -> Ho=Wo=7, S=49): exercises full-extent (non-8/128) blocks.
    x2 = jax.random.normal(k_x2, (N, C_in, 14, 14), dtype=jnp.float32)
    out2 = jax.block_until_ready(
        downsample_forward(x2, gamma, beta, weight, stride=stride, matmul_dtype=jnp.float32)
    )
    ref2 = _reference_forward(x2, gamma, beta, weight, stride=stride)
    assert out2.shape == (N, C_out, 7, 7)
    np.testing.assert_allclose(np.asarray(out2), np.asarray(ref2), rtol=1e-4, atol=1e-4)

    print("KERNEL_OK")
</pallas_src>

<mosaic_0001>
module attributes {stable_mosaic.version = 11 : i64} {
  func.func @_stats_kernel(%arg0: i32, %arg1: memref<1x4x16x16xf32, #tpu.memory_space<vmem>>, %arg2: memref<1x4x2xf32, #tpu.memory_space<vmem>>) attributes {dimension_semantics = [#tpu.dimension_semantics<parallel>], iteration_bounds = array<i64: 2>, scalar_prefetch = 0 : i64, scratch_operands = 0 : i64, tpu.core_type = #tpu.core_type<tc>, window_params = [{transform_indices = @transform_0, window_bounds = array<i64: 1, 4, 16, 16>}, {transform_indices = @transform_1, window_bounds = array<i64: 1, 4, 2>}]} {
    %c0 = arith.constant 0 : index
    %c0_0 = arith.constant 0 : index
    %c0_1 = arith.constant 0 : index
    %c0_2 = arith.constant 0 : index
    %0 = vector.load %arg1[%c0, %c0_0, %c0_1, %c0_2] : memref<1x4x16x16xf32, #tpu.memory_space<vmem>>, vector<1x4x16x16xf32>
    %1 = vector.shape_cast %0 : vector<1x4x16x16xf32> to vector<4x16x16xf32>
    %cst = arith.constant dense<0.000000e+00> : vector<4x16xf32>
    %2 = vector.multi_reduction <add>, %1, %cst [2] : vector<4x16x16xf32> to vector<4x16xf32>
    %3 = arith.mulf %1, %1 : vector<4x16x16xf32>
    %cst_3 = arith.constant dense<0.000000e+00> : vector<4x16xf32>
    %4 = vector.multi_reduction <add>, %3, %cst_3 [2] : vector<4x16x16xf32> to vector<4x16xf32>
    %cst_4 = arith.constant dense<0.000000e+00> : vector<4xf32>
    %5 = vector.multi_reduction <add>, %2, %cst_4 [1] : vector<4x16xf32> to vector<4xf32>
    %6 = vector.shape_cast %5 : vector<4xf32> to vector<4x1xf32>
    %cst_5 = arith.constant dense<0.000000e+00> : vector<4xf32>
    %7 = vector.multi_reduction <add>, %4, %cst_5 [1] : vector<4x16xf32> to vector<4xf32>
    %8 = vector.shape_cast %7 : vector<4xf32> to vector<4x1xf32>
    %9 = tpu.concatenate %6, %8 in 1 : vector<4x1xf32>, vector<4x1xf32> -> vector<4x2xf32>
    %c0_6 = arith.constant 0 : index
    %c0_7 = arith.constant 0 : index
    %c0_8 = arith.constant 0 : index
    %10 = vector.load %arg2[%c0_6, %c0_7, %c0_8] : memref<1x4x2xf32, #tpu.memory_space<vmem>>, vector<1x4x2xf32>
    %11 = vector.shape_cast %10 : vector<1x4x2xf32> to vector<4x2xf32>
    %12 = vector.shape_cast %9 : vector<4x2xf32> to vector<1x4x2xf32>
    tpu.vector_store %arg2[%c0_6, %c0_7, %c0_8], %12 {strides = array<i32>} : memref<1x4x2xf32, #tpu.memory_space<vmem>>, vector<1x4x2xf32>,
    return
  }
  func.func @transform_0(%arg0: i32) -> (i32, i32, i32, i32) {
    %c0_i32 = arith.constant 0 : i32
    %c0_i32_0 = arith.constant 0 : i32
    %c0_i32_1 = arith.constant 0 : i32
    %c0_i32_2 = arith.constant 0 : i32
    return %arg0, %c0_i32, %c0_i32_0, %c0_i32_1 : i32, i32, i32, i32
  }
  func.func @transform_1(%arg0: i32) -> (i32, i32, i32) {
    %c0_i32 = arith.constant 0 : i32
    %c0_i32_0 = arith.constant 0 : i32
    %c0_i32_1 = arith.constant 0 : i32
    return %arg0, %c0_i32, %c0_i32_0 : i32, i32, i32
  }
}

</mosaic_0001>

<bundles_post_ra>
// kernel: tpu_custom_call.1
= control target key start
LH: loop header
LB: loop body
LE: loop exit
PB: predicated region body
PF: predicated region fallthrough
CT: control target
= control target key end

     0   :  { %6 = vsyncpa [#allocation3], 0  ;;  %s652_s0 = inlined_call_operand.hbm [shape: f32[2,4,16,16], index: 0, kind: input, shape index: {}]   ;;  %s653_s1 = inlined_call_operand.vmem [shape: f32[2,4,2], index: 1, kind: output, shape index: {}]  }
   0x1   :  { %8 = vsyncpa [#allocation3 + $0x1], 0  ;;  %s509_s6 = smov 0   ;;  %s511_s7 = smov 0  }
   0x2   :  { %s513_s8 = smov 0   ;;  %s515_s9 = smov 0  }
   0x3 LB: > { %s528_s10 = sadd.s32 4294967295, %s494_s9   ;;  %s531_s11 = sadd.s32 1, %s494_s9   ;;  %s494_s9 = sphi %s515_s9, %s662_s9   ;;  %s490_s8 = sphi %s513_s8, %s661_s8   ;;  %s486_s7 = sphi %s511_s7, %s660_s7   ;;  %s482_s6 = sphi %s509_s6, %s659_s6  }
   0x4   : > { %s18_s12 = ssub.s32 %s494_s9, %s531_s11  ;;  %s21_s13 = sadd.s32 1, %s490_s8 }
   0x5   : > { %p19_p0 = scmp.eq.s32.totalorder %s18_s12, 0  ;;  %p28_p1 = scmp.ne.s32.totalorder %s490_s8, %s486_s7 }
   0x6   : > { %p29_p2 = scmp.eq.s32.totalorder %s494_s9, 0  ;;  %p34_p3 = scmp.ne.s32.totalorder %s486_s7, %s482_s6 }
   0x7   : > { %s541_s14 = scalar_select %p19_p0, %s490_s8, %s21_s13  }
   0x8   : > { %p30_p4 = por %p29_p2, %p28_p1  ;;  %p35_p5 = scmp.eq.s32.totalorder %s528_s10, 0 }
   0x9   : > { %p397_p6 = scmp.lt.s32.totalorder %s494_s9, 2  ;;  %s84_s16 = sand.u32 1, %s490_s8  }
   0xa   : > { %p545_p7 = por %p35_p5, %p34_p3  ;;  %s382_s17 = sshll.u32 %s84_s16, 6 }
   0xb   : > { %s390_s18 = sshll.u32 %s494_s9, 10  ;;  %s88_s22 = scalar_lea.vmem [#allocation2], %s382_s17 }
   0xc   : > { %s655_s15 = scalar_select %p545_p7, 1, 0 }
   0xd   : > { %s554_s21 = scalar_lea.hbm %s652_s0, %s390_s18  ;;  %s95_s23 = sshll.u32 %s88_s22, 4  ;;  %s556_s23 = int_to_ptr.vmem [resolvable:$true] %s95_s23 }
   0xe   : > { %p558_p8 = pnand %p397_p6, %p30_p4  ;;  %s563_s25 = scalar_lea.sflag [#allocation3], %s84_s16 }
   0xf   : > { %s432_s26 = scalar_lea.hbm %s554_s21, 1024  ;;  %s437_s29 = scalar_lea.hbm %s652_s0, 2048 }
  0x10   : > { %p433_p10 = scmp.ne.s32.totalorder %s554_s21, %s432_s26  ;;  %p434_p11 = pneg %p558_p8 }
  0x11   : > { %p438_p0 = scmp.lt.s32.totalorder %s554_s21, %s652_s0  ;;  %p439_p1 = scmp.lt.s32.totalorder %s437_s29, %s432_s26 }
  0x12   : > { %p435_p12 = pnand %p434_p11, %p433_p10 }
  0x13   : > { %p440_p2 = por %p439_p1, %p438_p0 }
  0x14   : > { %p436_p13 = pneg %p435_p12 }
  0x16   : > { %p441_p3 = pnand %p440_p2, %p436_p13 }
  0x18   : > { %444 = shalt.err (!%p441_p3)
}
  0x19   : > { %s445_s3 = scalar_lea.vmem %s556_s23, 1024  ;;  %s496_s4 = smov [#allocation2]  }
  0x1a   : > { %p446_p4 = scmp.ne.s32.totalorder %s556_s23, %s445_s3  ;;  %s450_s5 = sshll.u32 %s496_s4, 4  ;;  %s451_s5 = int_to_ptr.vmem [resolvable:$false] %s450_s5 }
  0x1b   : > { %s452_s6 = scalar_lea.vmem %s451_s5, 2048  ;;  %p453_p10 = scmp.lt.s32.totalorder %s556_s23, %s451_s5 }
  0x1c   : > { %p448_p5 = pnand %p446_p4, %p434_p11  ;;  %p454_p12 = scmp.lt.s32.totalorder %s452_s6, %s445_s3 }
  0x1e   : > { %p449_p6 = pneg %p448_p5  ;;  %p455_p9 = por %p454_p12, %p453_p10 }
  0x20   : > { %p456_p7 = pnand %p455_p9, %p449_p6 }
  0x22   : > { %459 = shalt.err (!%p456_p7)
}
  0x23   : > { %s497_s12 = smov 128   ;;  %s498_s13 = smov 8  }
  0x24   : > { %396 = dma.hbm_to_vmem [thread:$0]  (!%p558_p8), %s554_s21, 1024, %s556_s23, %s563_s25, %s497_s12, %s497_s12, %s498_s13  }
  0x25   : > { %p103_p11 = scmp.lt.s32.totalorder %s494_s9, 3  ;;  %p657_p13 = scmp.ge.s32.totalorder %s494_s9, 1 }
  0x27   : > { %p104_p0 = pnand %p657_p13, %p103_p11 }
  0x28   : > { %s109_s16 = sand.u32 (!%p104_p0), 1, %s486_s7   ;;  %p658_p7 = scmp.ne.s32.totalorder (!%p104_p0), %s655_s15, 0 }
  0x29   : > { %107 = sbr.rel (%p104_p0) target bundleno = 360 (0x168), region = 24  ;;  %s386_s17 = sshll.u32 (!%p104_p0), %s109_s16, 6 }
  0x2a   : > { %s110_s18 = scalar_lea.sflag (!%p104_p0), [#allocation3], %s109_s16  ;;  %s588_s19 = scalar_lea.vmem (!%p104_p0), [#allocation2], %s386_s17 }
  0x2e   : > { %477 = dma.done.wait (%p658_p7), %s110_s18, 1024  }
  0x2f   : > { %479 = vsyncadd (%p658_p7), %s110_s18, 4294966272  ;;  %vm143_vm0 = vcmask 130048   ;;  %v137_v0 = vld [vmem:[%s588_s19 + $0x10] sm:$0xff]  ;;  %v135_v1 = vld [vmem:[%s588_s19] sm:$0xff]  ;;  %v208_v36 = vlaneseq  ;;  %vm219_vm1 = vcmask 130112   ;;  %vm248_vm2 = vcmask 1041409  }
  0x30   : > { %v138_v2 = vld [vmem:[%s588_s19 + $0x18] sm:$0xff]  ;;  %v150_v3 = vsel %vm143_vm0, %v137_v0, 0.0  ;;  %v144_v4 = vsel %vm143_vm0, %v135_v1, 0.0  ;;  %v136_v5 = vld [vmem:[%s588_s19 + $0x8] sm:$0xff]  ;;  %v168_v6 = vmul.f32 %v135_v1, %v135_v1  ;;  %v170_v10 = vmul.f32 %v137_v0, %v137_v0  ;;  %v139_v17 = vld [vmem:[%s588_s19 + $0x20] sm:$0xff]  ;;  %p131_p8 = scmp.lt.s32.totalorder %s528_s10, 1 }
  0x31   : > { %151 = vadd.xlane.f32.xlu1 %v150_v3  ;;  %145 = vadd.xlane.f32.xlu0 %v144_v4  ;;  %v153_v7 = vsel %vm143_vm0, %v138_v2, 0.0  ;;  %v147_v8 = vsel %vm143_vm0, %v136_v5, 0.0  ;;  %v169_v9 = vmul.f32 %v136_v5, %v136_v5  ;;  %v171_v13 = vmul.f32 %v138_v2, %v138_v2  ;;  %v140_v16 = vld [vmem:[%s588_s19 + $0x28] sm:$0xff]  ;;  %v142_v24 = vld [vmem:[%s588_s19 + $0x38] sm:$0xff]  ;;  %v141_v25 = vld [vmem:[%s588_s19 + $0x30] sm:$0xff] }
  0x32   : > { %v176_v12 = vsel %vm143_vm0, %v168_v6, 0.0  ;;  %v182_v15 = vsel %vm143_vm0, %v170_v10, 0.0  ;;  %v159_v18 = vsel %vm143_vm0, %v140_v16, 0.0  ;;  %v156_v19 = vsel %vm143_vm0, %v139_v17, 0.0  ;;  %s664_s10 = smov (!%p131_p8, %s528_s10), 1 }
  0x33   : > { %v179_v11 = vsel %vm143_vm0, %v169_v9, 0.0  ;;  %v185_v14 = vsel %vm143_vm0, %v171_v13, 0.0  ;;  %v173_v20 = vmul.f32 %v140_v16, %v140_v16  ;;  %v172_v21 = vmul.f32 %v139_v17, %v139_v17  ;;  %s387_s9 = sshll.u32 %s664_s10, 2 }
  0x34   : > { %v165_v26 = vsel %vm143_vm0, %v142_v24, 0.0  ;;  %v162_v27 = vsel %vm143_vm0, %v141_v25, 0.0  ;;  %v175_v28 = vmul.f32 %v142_v24, %v142_v24  ;;  %v174_v29 = vmul.f32 %v141_v25, %v141_v25  ;;  %s134_s21 = scalar_lea.vmem %s653_s1, %s387_s9 }
  0x35   : > { %154 = vadd.xlane.f32.xlu1 %v153_v7  ;;  %148 = vadd.xlane.f32.xlu0 %v147_v8  ;;  %v191_v22 = vsel %vm143_vm0, %v173_v20, 0.0  ;;  %v188_v23 = vsel %vm143_vm0, %v172_v21, 0.0  ;;  %v209_v39 = vand.u32 127, %v208_v36  ;;  %v211_v43 = vshrl.u32 %v208_v36, 7 }
  0x36   : > { %v197_v30 = vsel %vm143_vm0, %v175_v28, 0.0  ;;  %v194_v31 = vsel %vm143_vm0, %v174_v29, 0.0  ;;  %vm250_vm3 = vcmask 1042434   ;;  %vm252_vm4 = vcmask 1043459  }
  0x37   : > { %v214_v40 = vadd.s32 4294967288, %v209_v39  ;;  %v212_v47 = vsub.s32 %v209_v39, %v211_v43  ;;  %vm255_vm5 = vcmask 125952   ;;  %vm310_vm6 = vcmask 7168  }
  0x38   : > { %vm312_vm7 = vcmask 11264  }
  0x39   : > { %180 = vadd.xlane.f32.xlu1 %v179_v11  ;;  %177 = vadd.xlane.f32.xlu0 %v176_v12  ;;  %v217_v44 = vsub.s32 %v214_v40, %v211_v43 }
  0x3d   : > { %186 = vadd.xlane.f32.xlu1 %v185_v14  ;;  %183 = vadd.xlane.f32.xlu0 %v182_v15 }
  0x41   : > { %160 = vadd.xlane.f32.xlu1 %v159_v18  ;;  %157 = vadd.xlane.f32.xlu0 %v156_v19 }
  0x45   : > { %192 = vadd.xlane.f32.xlu1 %v191_v22  ;;  %189 = vadd.xlane.f32.xlu0 %v188_v23 }
  0x49   : > { %166 = vadd.xlane.f32.xlu1 %v165_v26  ;;  %163 = vadd.xlane.f32.xlu0 %v162_v27 }
  0x4d   : > { %198 = vadd.xlane.f32.xlu1 %v197_v30  ;;  %195 = vadd.xlane.f32.xlu0 %v194_v31 }
  0xba   : > { %v152_v32 = vpop.xlane.xlu1 %151  ;;  %v146_v33 = vpop.xlane.xlu0 %145 }
  0xbb   : > { %v224_v54 = vrot.slane %v152_v32, %v212_v47  ;;  %v213_v55 = vrot.slane %v146_v33, %v212_v47 }
  0xbe   : > { %v155_v34 = vpop.xlane.xlu1 %154  ;;  %v149_v35 = vpop.xlane.xlu0 %148 }
  0xbf   : > { %v228_v48 = vrot.slane %v155_v34, %v217_v44  ;;  %v218_v49 = vrot.slane %v149_v35, %v217_v44 }
  0xc1   : > { %v229_v56 = vsel %vm219_vm1, %v228_v48, %v224_v54  ;;  %v220_v57 = vsel %vm219_vm1, %v218_v49, %v213_v55 }
  0xc2   : > { %v181_v37 = vpop.xlane.xlu1 %180  ;;  %v178_v38 = vpop.xlane.xlu0 %177  ;;  %v249_v5 = vsel %vm248_vm2, %v229_v56, %v220_v57 }
  0xc3   : > { %v274_v1 = vrot.slane %v181_v37, %v217_v44  ;;  %v270_v2 = vrot.slane %v178_v38, %v212_v47 }
  0xc5   : > { %v275_v13 = vsel %vm219_vm1, %v274_v1, %v270_v2 }
  0xc6   : > { %v187_v41 = vpop.xlane.xlu1 %186  ;;  %v184_v42 = vpop.xlane.xlu0 %183 }
  0xc7   : > { %v283_v58 = vrot.slane %v187_v41, %v217_v44  ;;  %v279_v59 = vrot.slane %v184_v42, %v212_v47 }
  0xc9   : > { %v284_v6 = vsel %vm219_vm1, %v283_v58, %v279_v59 }
  0xca   : > { %v161_v45 = vpop.xlane.xlu1 %160  ;;  %v158_v46 = vpop.xlane.xlu0 %157  ;;  %v303_v17 = vsel %vm248_vm2, %v284_v6, %v275_v13 }
  0xcb   : > { %v237_v50 = vrot.slane %v161_v45, %v217_v44  ;;  %v233_v51 = vrot.slane %v158_v46, %v212_v47 }
  0xcd   : > { %v238_v60 = vsel %vm219_vm1, %v237_v50, %v233_v51 }
  0xce   : > { %v193_v52 = vpop.xlane.xlu1 %192  ;;  %v190_v53 = vpop.xlane.xlu0 %189  ;;  %v251_v8 = vsel %vm250_vm3, %v238_v60, %v249_v5 }
  0xcf   : > { %v292_v61 = vrot.slane %v193_v52, %v217_v44  ;;  %v288_v62 = vrot.slane %v190_v53, %v212_v47 }
  0xd1   : > { %v293_v9 = vsel %vm219_vm1, %v292_v61, %v288_v62 }
  0xd2   : > { %v167_v63 = vpop.xlane.xlu1 %166  ;;  %v164_v0 = vpop.xlane.xlu0 %163  ;;  %v304_v19 = vsel %vm250_vm3, %v293_v9, %v303_v17 }
  0xd3   : > { %v246_v3 = vrot.slane %v167_v63, %v217_v44  ;;  %v242_v4 = vrot.slane %v164_v0, %v212_v47 }
  0xd5   : > { %v247_v7 = vsel %vm219_vm1, %v246_v3, %v242_v4 }
  0xd6   : > { %v199_v10 = vpop.xlane.xlu1 %198  ;;  %v196_v11 = vpop.xlane.xlu0 %195  ;;  %v253_v12 = vsel %vm252_vm4, %v247_v7, %v251_v8 }
  0xd7   : > { %v301_v14 = vrot.slane %v199_v10, %v217_v44  ;;  %v297_v15 = vrot.slane %v196_v11, %v212_v47  ;;  %v256_v16 = vsel %vm255_vm5, %v253_v12, 0.0 }
  0xd8   : > { %257 = vadd.xlane.f32.xlu0 %v256_v16 }
  0xd9   : > { %v302_v18 = vsel %vm219_vm1, %v301_v14, %v297_v15 }
  0xda   : > { %v305_v20 = vsel %vm252_vm4, %v302_v18, %v304_v19 }
  0xdb   : > { %v307_v21 = vsel %vm255_vm5, %v305_v20, 0.0 }
  0xdc   : > { %308 = vadd.xlane.f32.xlu1 %v307_v21 }
 0x161   : > { %v258_v22 = vpop.xlane.xlu0 %257 }
 0x165   : > { %v309_v23 = vpop.xlane.xlu1 %308 }
 0x166   : > { %v311_v24 = vsel %vm310_vm6, %v258_v22, %v309_v23 }
 0x167   : > { %313 = vst.msk [vmem:[%s134_s21] sm:$0xf] %vm312_vm7, %v311_v24 }
 0x168 PF: > { %p11_p9 = scmp.ge.s32.totalorder %s531_s11, 4   ;;  %s659_s6 = smov %s486_s7 }
 0x169   : > { %s660_s7 = smov %s490_s8  ;;  %s661_s8 = smov %s541_s14 }
 0x16a   : > { %s662_s9 = smov %s531_s11  ;;  %13 = sbr.rel (!%p11_p9) target bundleno = 3 (0x3), region = 64 }
 0x16f   :  { %333 = vsyncpa [#allocation3], 1 }
 0x170   :  { %335 = vsyncpa [#allocation3 + $0x1], 1 }

</bundles_post_ra>
